<compile_context>
chip_gen: v7x
topology: tpu7x:2x2x1
jax: 0.10.0
libtpu: 0.0.40
codegen_flags: <defaults>
</compile_context>

<pallas_src>
import jax
import jax.numpy as jnp
from jax.experimental import pallas as pl
from jax.experimental.pallas import tpu as pltpu

_MIB = 1024 * 1024


def _normalize_kernel(scale_ref, bias_ref, x_ref, o_ref):
    # x_ref: (b_rows, b_lanes); scale/bias: (b_rows, 1) f32, broadcast over lanes.
    # Single fused multiply-add on the VPU; explicit cast to the output dtype.
    o_ref[...] = (x_ref[...] * scale_ref[...] + bias_ref[...]).astype(o_ref.dtype)


def _sublane_unit(dtype) -> int:
    """Sublane packing unit: 8 for 32-bit, 16 for 16-bit, 32 for 8-bit dtypes."""
    return {4: 8, 2: 16, 1: 32}.get(jnp.dtype(dtype).itemsize, 8)


def _pick_tile(dim: int, unit: int, cap: int) -> int:
    """Full dimension when it fits under `cap`, else a fixed `unit`-aligned tile.

    Ragged tails are handled by the cdiv grid (Pallas masks the last block), so
    tiles never need to divide the dimension evenly.
    """
    if dim <= cap:
        return dim
    return (cap // unit) * unit


def _even_grid_tile(dim: int, tile: int, unit: int) -> int:
    """Best effort: shrink `tile` (keeping unit alignment) so cdiv(dim, tile) is even.

    v7x shards the leading parallel grid axis across its 2 TensorCores; an odd
    extent strands one core with an extra tail block.  Never affects correctness
    and is a no-op on single-TC v5e/v6e.
    """
    if tile % unit != 0:
        return tile  # tile == full dim; shrinking would break block legality.
    steps = pl.cdiv(dim, tile)
    if steps <= 1 or steps % 2 == 0:
        return tile
    t = tile - unit
    while t >= max(unit, tile // 2):
        if pl.cdiv(dim, t) % 2 == 0:
            return t
        t -= unit
    return tile


def image_normalizer(x: jax.Array, mean: jax.Array, std: jax.Array) -> jax.Array:
    """(x - mean[None, :, None, None]) / std[None, :, None, None] for NCHW x."""
    n, c, h, w = x.shape
    assert mean.shape == (c,) and std.shape == (c,)
    nc, hw = n * c, h * w

    # PyTorch semantics: float mean/std buffers promote integer images to float.
    out_dtype = x.dtype if jnp.issubdtype(x.dtype, jnp.floating) else jnp.float32

    # Host-side precompute keeps the kernel divide-free: row r of the flattened
    # (N*C, H*W) view corresponds to channel r % c.
    inv_std = (1.0 / std.astype(jnp.float32))
    scale = jnp.tile(inv_std, n).reshape(nc, 1)
    bias = jnp.tile((-mean.astype(jnp.float32)) * inv_std, n).reshape(nc, 1)

    x2 = x.reshape(nc, hw)  # lane-dense 2D view

    # --- Per-generation VMEM budget -----------------------------------------
    try:
        vmem_physical = int(pltpu.get_tpu_info().vmem_capacity_bytes)
    except Exception:
        vmem_physical = 64 * _MIB  # conservative: assume v7x (64 MiB physical)
    if vmem_physical >= 128 * _MIB:   # v5e / v6e
        block_byte_cap, vmem_ceiling = 8 * _MIB, 96 * _MIB
    else:                             # v7x or unknown
        block_byte_cap, vmem_ceiling = 4 * _MIB, 48 * _MIB

    # --- Alignment-only tiles + cdiv grid ------------------------------------
    row_unit = _sublane_unit(x.dtype)
    rows_cap = 256
    itemsize = max(jnp.dtype(x.dtype).itemsize, jnp.dtype(out_dtype).itemsize)
    lanes_cap = max(128, (block_byte_cap // (rows_cap * itemsize)) // 128 * 128)

    b_rows = _pick_tile(nc, row_unit, rows_cap)
    b_lanes = _pick_tile(hw, 128, lanes_cap)
    b_rows = _even_grid_tile(nc, b_rows, row_unit)  # balance v7x's 2 TCs

    grid = (pl.cdiv(nc, b_rows), pl.cdiv(hw, b_lanes))

    # in + out pipelines, double-buffered, plus tiny scale/bias blocks + slack.
    block_bytes = b_rows * b_lanes * (jnp.dtype(x.dtype).itemsize
                                      + jnp.dtype(out_dtype).itemsize)
    needed = 2 * block_bytes + 2 * (2 * b_rows * 4) + 2 * _MIB
    vmem_limit = int(min(vmem_ceiling, max(32 * _MIB, needed)))

    out2 = pl.pallas_call(
        _normalize_kernel,
        out_shape=jax.ShapeDtypeStruct((nc, hw), out_dtype),
        grid_spec=pl.GridSpec(
            grid=grid,
            in_specs=[
                # Per-row scale / bias column vectors (tiny, VMEM-resident).
                pl.BlockSpec((b_rows, 1), lambda i, j: (i, 0)),
                pl.BlockSpec((b_rows, 1), lambda i, j: (i, 0)),
                # Lane-dense activation tile (default double-buffering).
                pl.BlockSpec((b_rows, b_lanes), lambda i, j: (i, j)),
            ],
            out_specs=pl.BlockSpec((b_rows, b_lanes), lambda i, j: (i, j)),
        ),
        compiler_params=pltpu.CompilerParams(
            # Both axes independent -> shardable across v7x's 2 TensorCores.
            dimension_semantics=("parallel", "parallel"),
            vmem_limit_bytes=vmem_limit,
        ),
    )(scale, bias, x2)

    return out2.reshape(n, c, h, w)


if __name__ == "__main__":
    key = jax.random.PRNGKey(0)

    # Small NCHW input consistent with the module: batch=2, 3 channels, 16x16.
    N, C, H, W = 2, 3, 16, 16
    x = jax.random.uniform(key, (N, C, H, W), dtype=jnp.float32)

    # Deterministic buffers (CIFAR-10-style normalization constants).
    mean = jnp.asarray([0.4914, 0.4822, 0.4465], dtype=jnp.float32)
    std = jnp.asarray([0.2471, 0.2435, 0.2616], dtype=jnp.float32)

    out = jax.block_until_ready(image_normalizer(x, mean, std))

    # Reference: (x - mean.view(1,3,1,1)) / std.view(1,3,1,1).
    ref = (x - mean.reshape(1, C, 1, 1)) / std.reshape(1, C, 1, 1)
    assert out.shape == x.shape and out.dtype == x.dtype
    assert jnp.allclose(out, ref, atol=1e-5, rtol=1e-5)

    print("KERNEL_OK")
</pallas_src>

<mosaic_0001>
module attributes {stable_mosaic.version = 11 : i64} {
  func.func @_normalize_kernel(%arg0: i32, %arg1: i32, %arg2: memref<6x1xf32, #tpu.memory_space<vmem>>, %arg3: memref<6x1xf32, #tpu.memory_space<vmem>>, %arg4: memref<6x256xf32, #tpu.memory_space<vmem>>, %arg5: memref<6x256xf32, #tpu.memory_space<vmem>>) attributes {dimension_semantics = [#tpu.dimension_semantics<parallel>, #tpu.dimension_semantics<parallel>], iteration_bounds = array<i64: 1, 1>, scalar_prefetch = 0 : i64, scratch_operands = 0 : i64, tpu.core_type = #tpu.core_type<tc>, window_params = [{transform_indices = @transform_0, window_bounds = array<i64: 6, 1>}, {transform_indices = @transform_1, window_bounds = array<i64: 6, 1>}, {transform_indices = @transform_2, window_bounds = array<i64: 6, 256>}, {transform_indices = @transform_3, window_bounds = array<i64: 6, 256>}]} {
    %c0 = arith.constant 0 : index
    %c0_0 = arith.constant 0 : index
    %0 = vector.load %arg4[%c0, %c0_0] : memref<6x256xf32, #tpu.memory_space<vmem>>, vector<6x256xf32>
    %c0_1 = arith.constant 0 : index
    %c0_2 = arith.constant 0 : index
    %1 = vector.load %arg2[%c0_1, %c0_2] : memref<6x1xf32, #tpu.memory_space<vmem>>, vector<6x1xf32>
    %2 = vector.broadcast %1 : vector<6x1xf32> to vector<6x256xf32>
    %3 = arith.mulf %0, %2 : vector<6x256xf32>
    %c0_3 = arith.constant 0 : index
    %c0_4 = arith.constant 0 : index
    %4 = vector.load %arg3[%c0_3, %c0_4] : memref<6x1xf32, #tpu.memory_space<vmem>>, vector<6x1xf32>
    %5 = vector.broadcast %4 : vector<6x1xf32> to vector<6x256xf32>
    %6 = arith.addf %3, %5 : vector<6x256xf32>
    %c0_5 = arith.constant 0 : index
    %c0_6 = arith.constant 0 : index
    %7 = vector.load %arg5[%c0_5, %c0_6] : memref<6x256xf32, #tpu.memory_space<vmem>>, vector<6x256xf32>
    tpu.vector_store %arg5[%c0_5, %c0_6], %6 {strides = array<i32>} : memref<6x256xf32, #tpu.memory_space<vmem>>, vector<6x256xf32>,
    return
  }
  func.func @transform_0(%arg0: i32, %arg1: i32) -> (i32, i32) {
    %c0_i32 = arith.constant 0 : i32
    %c0_i32_0 = arith.constant 0 : i32
    return %arg0, %c0_i32 : i32, i32
  }
  func.func @transform_1(%arg0: i32, %arg1: i32) -> (i32, i32) {
    %c0_i32 = arith.constant 0 : i32
    %c0_i32_0 = arith.constant 0 : i32
    return %arg0, %c0_i32 : i32, i32
  }
  func.func @transform_2(%arg0: i32, %arg1: i32) -> (i32, i32) {
    %c0_i32 = arith.constant 0 : i32
    return %arg0, %arg1 : i32, i32
  }
  func.func @transform_3(%arg0: i32, %arg1: i32) -> (i32, i32) {
    %c0_i32 = arith.constant 0 : i32
    return %arg0, %arg1 : i32, i32
  }
}

</mosaic_0001>

<bundles_post_ra>
// kernel: tpu_custom_call.1
= control target key start
LH: loop header
LB: loop body
LE: loop exit
PB: predicated region body
PF: predicated region fallthrough
CT: control target
= control target key end

     0   :  { %v76_v1 = vmov 0   ;;  %s122_s0 = inlined_call_operand.vmem [shape: f32[6,1], index: 0, kind: input, shape index: {}]   ;;  %s123_s1 = inlined_call_operand.vmem [shape: f32[6,1], index: 1, kind: input, shape index: {}]   ;;  %s124_s2 = inlined_call_operand.vmem [shape: f32[6,256], index: 2, kind: input, shape index: {}]   ;;  %s125_s3 = inlined_call_operand.hbm [shape: f32[6,256], index: 3, kind: output, shape index: {}]  }
   0x1   :  { %v17_v0 = vld [vmem:[%s122_s0] sm:$0x3f]  ;;  %51 = vset.pattern.permute.xlu0 %v76_v1 }
   0x2   :  { %8 = vsyncpa [#allocation3], 0  ;;  %20 = vperm.xlu0 %51, %v17_v0   ;;  %v25_v2 = vld [vmem:[%s123_s1] sm:$0x3f]  ;;  %v16_v5 = vld [vmem:[%s124_s2 + $0x8] sm:$0x3f] }
   0x3   :  { %v15_v4 = vld [vmem:[%s124_s2] sm:$0x3f]  ;;  %s77_s20 = smov [#allocation2]  }
   0x4   :  { %s41_s0 = sshll.u32 %s77_s20, 4  ;;  %s42_s0 = int_to_ptr.vmem [resolvable:$true] %s41_s0 }
   0x5   :  { %s52_s1 = scalar_lea.vmem %s42_s0, 256  ;;  %p57_p1 = scmp.lt.s32.totalorder %s42_s0, %s42_s0 }
   0x6   :  { %28 = vperm.xlu0 %51, %v25_v2   ;;  %p53_p0 = scmp.ne.s32.totalorder %s42_s0, %s52_s1  ;;  %p58_p2 = scmp.lt.s32.totalorder %s52_s1, %s52_s1 }
   0x8   :  { %p59_p3 = por %p58_p2, %p57_p1 }
   0xa   :  { %p60_p4 = pnand %p59_p3, %p53_p0 }
  0x81   :  { %v21_v3 = vpop.permute.xlu0 %20 }
  0x82   :  { %v23_v6 = vmul.f32 %v21_v3, %v15_v4  ;;  %v24_v7 = vmul.f32 %v21_v3, %v16_v5 }
  0x85   :  { %v29_v8 = vpop.permute.xlu0 %28 }
  0x86   :  { %v31_v9 = vadd.f32 %v29_v8, %v23_v6  ;;  %v32_v10 = vadd.f32 %v29_v8, %v24_v7 }
  0x88   :  { %33 = vst [vmem:[#allocation2] sm:$0x3f] %v31_v9  ;;  %34 = vst [vmem:[#allocation2 + $0x8] sm:$0x3f] %v32_v10 }
  0x89   :  { %63 = shalt.err (!%p60_p4)
}
  0x8a   :  { %s64_s2 = scalar_lea.hbm %s125_s3, 256 }
  0x8b   :  { %p65_p5 = scmp.ne.s32.totalorder %s125_s3, %s64_s2  ;;  %p68_p6 = scmp.lt.u32.totalorder %s64_s2, %s125_s3 }
  0x8d   :  { %p70_p7 = pnand %p68_p6, %p65_p5 }
  0x8f   :  { %73 = shalt.err (!%p70_p7)
}
  0x90   :  { %44 = dma.vmem_to_hbm [thread:$0]  %s42_s0, 256, %s125_s3, [#allocation3]  }
  0x91   :  { %74 = dma.done.wait [#allocation3], 256  }
  0x92   :  { %75 = vsyncadd [#allocation3], 4294967040 }
  0x93   :  { %48 = vsyncpa [#allocation3], 1 }

</bundles_post_ra>
